<compile_context>
chip_gen: v7x
topology: tpu7x:2x2x1
jax: 0.10.0
libtpu: 0.0.40
codegen_flags: <defaults>
</compile_context>

<pallas_src>
import math
import functools

import jax
import jax.numpy as jnp
from jax.experimental import pallas as pl
from jax.experimental.pallas import tpu as pltpu


def _round_up(n, m):
    return ((n + m - 1) // m) * m


# ---------------------------------------------------------------------------
# Device / capability queries (cached).
# ---------------------------------------------------------------------------

@functools.lru_cache(maxsize=None)
def _vmem_budget_bytes():
    """Generation-aware scoped-VMEM budget (~82% of physical per-core VMEM)."""
    try:
        cap = pltpu.get_tpu_info().vmem_capacity_bytes
    except Exception:
        cap = 64 * 1024 * 1024          # conservative fallback: v7x per-TensorCore VMEM
    return int(cap * 0.82)              # ~52 MiB on v7x, ~105 MiB on v5e/v6e


def _probe_kernel(x_ref, o_ref):
    o_ref[...] = x_ref[...]


@functools.lru_cache(maxsize=None)
def _single_buffer_supported():
    """Probe pipeline_mode=pl.Buffered(1) for constant-index blocks."""
    try:
        f = pl.pallas_call(
            _probe_kernel,
            out_shape=jax.ShapeDtypeStruct((16, 128), jnp.float32),
            grid_spec=pltpu.PrefetchScalarGridSpec(
                num_scalar_prefetch=0,
                grid=(2,),
                in_specs=[pl.BlockSpec((8, 128), lambda i: (0, 0),
                                       pipeline_mode=pl.Buffered(1))],
                out_specs=pl.BlockSpec((8, 128), lambda i: (i, 0)),
            ),
        )
        jax.block_until_ready(f(jnp.zeros((8, 128), jnp.float32)))
        return True
    except Exception:
        return False


def _const_spec(shape):
    """BlockSpec for an operand whose block never changes across grid steps."""
    if _single_buffer_supported():
        return pl.BlockSpec(shape, lambda *_: (0,) * len(shape),
                            pipeline_mode=pl.Buffered(1))
    return pl.BlockSpec(shape, lambda *_: (0,) * len(shape))


# ---------------------------------------------------------------------------
# In-kernel math helpers.
# ---------------------------------------------------------------------------

_INV_SQRT2 = 1.0 / math.sqrt(2.0)
_TANH_C = math.sqrt(2.0 / math.pi)


def _gelu(h, approx):
    if approx:
        # tanh form: routes through the EUP slot on v6e/v7x (perf opt-in, small numeric delta)
        return 0.5 * h * (1.0 + jnp.tanh(_TANH_C * (h + 0.044715 * h * h * h)))
    # exact erf GELU -- matches the PyTorch module's semantics
    return h * 0.5 * (1.0 + jax.lax.erf(h * _INV_SQRT2))


def _layer_norm(z, gamma, beta, eps, h_true):
    """LayerNorm over the last axis; statistics restricted to the first h_true columns.

    Padded hidden columns of z are exactly zero by construction (zero-padded x, w2 columns,
    b2), so only the variance term needs explicit masking.
    """
    h_pad = z.shape[-1]
    inv_h = 1.0 / float(h_true)
    mean = jnp.sum(z, axis=-1, keepdims=True) * inv_h
    diff = z - mean
    if h_pad != h_true:
        col = jax.lax.broadcasted_iota(jnp.int32, z.shape, z.ndim - 1)
        diff = jnp.where(col < h_true, diff, 0.0)
    var = jnp.sum(diff * diff, axis=-1, keepdims=True) * inv_h
    return (z - mean) * jax.lax.rsqrt(var + eps) * gamma + beta


# ---------------------------------------------------------------------------
# Kernels.
# ---------------------------------------------------------------------------

def _make_resident_kernel(eps, h_true, compute_dtype, approx_gelu):
    """Weights fully VMEM-resident; grid over row tiles only."""
    def kernel(x_ref, w1_ref, b1_ref, w2_ref, b2_ref, gamma_ref, beta_ref, o_ref):
        x = x_ref[...]                                              # (TM, Hp) f32
        h = jnp.dot(x.astype(compute_dtype), w1_ref[...],
                    preferred_element_type=jnp.float32) + b1_ref[...]
        h = _gelu(h, approx_gelu)
        y = jnp.dot(h.astype(compute_dtype), w2_ref[...],
                    preferred_element_type=jnp.float32) + b2_ref[...]
        # dropout: inference-mode identity.
        # TODO(synk): training-mode dropout (stochastic masking) not implemented.
        z = y + x
        o_ref[...] = _layer_norm(z, gamma_ref[...], beta_ref[...],
                                 eps, h_true).astype(o_ref.dtype)
    return kernel


def _make_streamed_kernel(eps, h_true, compute_dtype, approx_gelu):
    """Inner dim streamed in blocks (reduction grid axis) with a (TM, Hp) f32 accumulator."""
    def kernel(x_ref, w1_ref, b1_ref, w2_ref, b2_ref, gamma_ref, beta_ref, o_ref, acc_ref):
        k = pl.program_id(1)

        @pl.when(k == 0)
        def _():
            acc_ref[...] = jnp.zeros_like(acc_ref)

        x = x_ref[...]                                              # resident across k
        h = jnp.dot(x.astype(compute_dtype), w1_ref[...],
                    preferred_element_type=jnp.float32) + b1_ref[...]
        h = _gelu(h, approx_gelu)
        acc_ref[...] += jnp.dot(h.astype(compute_dtype), w2_ref[...],
                                preferred_element_type=jnp.float32)

        @pl.when(k == pl.num_programs(1) - 1)
        def _():
            z = acc_ref[...] + b2_ref[...] + x
            o_ref[...] = _layer_norm(z, gamma_ref[...], beta_ref[...],
                                     eps, h_true).astype(o_ref.dtype)
    return kernel


# ---------------------------------------------------------------------------
# Wrapper.
# ---------------------------------------------------------------------------

def feed_forward(x, w1, b1, w2, b2, gamma, beta, eps, *,
                 block_rows=512, block_inner=None,
                 compute_dtype=jnp.bfloat16, approx_gelu=False):
    """FeedForward forward pass.  x: (batch, seq, hidden) float32, returns the same shape.

    w1: (hidden, inner), w2: (inner, hidden).  Pre-cast w1/w2 to `compute_dtype` once at
    parameter level for best performance (the in-call astype is then a no-op).
    """
    B, S, H = x.shape
    I = w1.shape[1]
    M = B * S
    eps = float(eps)
    wsz = jnp.dtype(compute_dtype).itemsize

    # --- lane-dense hidden: pad H to a multiple of 128 (LayerNorm masked to true H) -----
    H_pad = _round_up(H, 128)
    x2d = x.reshape(M, H)
    w1c = w1.astype(compute_dtype)
    w2c = w2.astype(compute_dtype)
    b1r = b1.reshape(1, I).astype(jnp.float32)
    b2r = b2.reshape(1, H).astype(jnp.float32)
    gmr = gamma.reshape(1, H).astype(jnp.float32)
    btr = beta.reshape(1, H).astype(jnp.float32)
    if H_pad != H:
        # TODO(synk): for odd hidden sizes, pre-pad the parameters once outside the call path.
        ph = H_pad - H
        x2d = jnp.pad(x2d, ((0, 0), (0, ph)))
        w1c = jnp.pad(w1c, ((0, ph), (0, 0)))
        w2c = jnp.pad(w2c, ((0, 0), (0, ph)))
        b2r = jnp.pad(b2r, ((0, 0), (0, ph)))
        gmr = jnp.pad(gmr, ((0, 0), (0, ph)))
        btr = jnp.pad(btr, ((0, 0), (0, ph)))

    budget = _vmem_budget_bytes()

    # --- VMEM estimates -------------------------------------------------------------------
    def resident_vmem(tm):
        return (2 * H_pad * I * wsz                 # w1 + w2 (single-buffered)
                + (I + 3 * H_pad) * 4               # b1, b2, gamma, beta
                + 2 * 2 * tm * H_pad * 4            # x in + out, double-buffered
                + tm * I * (4 + wsz)                # (TM, I) activation f32 + MXU copy
                + 3 * tm * H_pad * 4)               # epilogue temporaries

    def streamed_vmem(tm, ti):
        return (2 * 2 * H_pad * ti * wsz            # w1/w2 slices, double-buffered
                + 2 * ti * 4 + 3 * H_pad * 4
                + 2 * 2 * tm * H_pad * 4            # x in + out
                + tm * H_pad * 4                    # f32 accumulator scratch
                + tm * ti * (4 + wsz)
                + 3 * tm * H_pad * 4)

    # --- row tile: start big (amortize per-step overhead, MXU-aligned), shrink to fit -----
    TM = min(block_rows, _round_up(M, 8))
    while TM > 64 and resident_vmem(TM) > budget:
        TM = max(64, _round_up(TM // 2, 8))

    # --- resident weights vs streamed inner-dim reduction axis ----------------------------
    TI = None
    if block_inner is not None:
        if I % block_inner or (block_inner % 128 and block_inner != I):
            raise ValueError("block_inner must divide the inner dim and be a multiple of 128")
        TI = int(block_inner)
    elif resident_vmem(TM) > budget:
        cand = (min(I, 2048) // 128) * 128
        while cand >= 128:
            if I % cand == 0 and streamed_vmem(TM, cand) <= budget:
                TI = cand
                break
            cand -= 128
        # if no valid TI (e.g. I not a multiple of 128), fall back to the resident path.

    # --- pad rows so the grid divides evenly (padded rows sliced off before returning) ----
    M_pad = _round_up(M, TM)
    if M_pad != M:
        x2d = jnp.pad(x2d, ((0, M_pad - M), (0, 0)))

    cost = pl.CostEstimate(
        flops=int(4 * M_pad * H_pad * I),
        transcendentals=int(M_pad * I),
        bytes_accessed=int(2 * M_pad * H_pad * 4 + 2 * H_pad * I * wsz
                           + (I + 3 * H_pad) * 4),
    )

    if TI is None:
        grid = (M_pad // TM,)
        kernel = _make_resident_kernel(eps, H, compute_dtype, approx_gelu)
        in_specs = [
            pl.BlockSpec((TM, H_pad), lambda i: (i, 0)),        # x: streamed row tiles
            _const_spec((H_pad, I)),                            # w1: VMEM-resident
            _const_spec((1, I)),                                # b1
            _const_spec((I, H_pad)),                            # w2: VMEM-resident
            _const_spec((1, H_pad)),                            # b2
            _const_spec((1, H_pad)),                            # gamma
            _const_spec((1, H_pad)),                            # beta
        ]
        out_specs = pl.BlockSpec((TM, H_pad), lambda i: (i, 0))
        scratch_shapes = ()
        dim_sems = ("parallel",)
    else:
        grid = (M_pad // TM, I // TI)                           # reduction axis last
        kernel = _make_streamed_kernel(eps, H, compute_dtype, approx_gelu)
        in_specs = [
            pl.BlockSpec((TM, H_pad), lambda i, k: (i, 0)),     # x: resident across k
            pl.BlockSpec((H_pad, TI), lambda i, k: (0, k)),     # w1 column block
            pl.BlockSpec((1, TI), lambda i, k: (0, k)),         # b1 block
            pl.BlockSpec((TI, H_pad), lambda i, k: (k, 0)),     # w2 row block
            _const_spec((1, H_pad)),                            # b2
            _const_spec((1, H_pad)),                            # gamma
            _const_spec((1, H_pad)),                            # beta
        ]
        out_specs = pl.BlockSpec((TM, H_pad), lambda i, k: (i, 0))
        scratch_shapes = (pltpu.VMEM((TM, H_pad), jnp.float32),)
        dim_sems = ("parallel", "arbitrary")

    out2d = pl.pallas_call(
        kernel,
        out_shape=jax.ShapeDtypeStruct((M_pad, H_pad), jnp.float32),
        grid_spec=pltpu.PrefetchScalarGridSpec(
            num_scalar_prefetch=0,
            grid=grid,
            in_specs=in_specs,
            out_specs=out_specs,
            scratch_shapes=scratch_shapes,
        ),
        compiler_params=pltpu.CompilerParams(
            dimension_semantics=dim_sems,
            vmem_limit_bytes=budget,
        ),
        cost_estimate=cost,
    )(x2d, w1c, b1r, w2c, b2r, gmr, btr)

    # NOTE: rows >= M and columns >= H of out2d are padding garbage until sliced here.
    out2d = out2d[:M, :H]
    return out2d.reshape(B, S, H)


# ---------------------------------------------------------------------------
# Demo / self-check.
# ---------------------------------------------------------------------------

def xavier_uniform(key, shape):
    fan_in, fan_out = shape[0], shape[1]
    bound = math.sqrt(6.0 / (fan_in + fan_out))
    return jax.random.uniform(key, shape, jnp.float32, -bound, bound)


def _reference(x, w1, b1, w2, b2, gamma, beta, eps, cast_bf16):
    B, S, H = x.shape
    x2 = x.reshape(-1, H)
    if cast_bf16:
        h = jnp.dot(x2.astype(jnp.bfloat16), w1.astype(jnp.bfloat16),
                    preferred_element_type=jnp.float32) + b1
    else:
        h = x2 @ w1 + b1
    h = h * 0.5 * (1.0 + jax.lax.erf(h / math.sqrt(2.0)))
    if cast_bf16:
        y = jnp.dot(h.astype(jnp.bfloat16), w2.astype(jnp.bfloat16),
                    preferred_element_type=jnp.float32) + b2
    else:
        y = h @ w2 + b2
    z = y + x2
    mu = z.mean(-1, keepdims=True)
    var = ((z - mu) ** 2).mean(-1, keepdims=True)
    return (((z - mu) * jax.lax.rsqrt(var + eps)) * gamma + beta).reshape(x.shape)


if __name__ == "__main__":
    layer_norm_eps = 1e-12
    hidden_dropout_prob = 0.1   # inactive (eval mode)
    key = jax.random.PRNGKey(0)

    def make_params(k, hidden, inner):
        k1, k2, kb1, kb2 = jax.random.split(k, 4)
        w1 = xavier_uniform(k1, (hidden, inner))
        b1 = (jax.random.normal(kb1, (1, inner)) * 1e-6).astype(jnp.float32)
        w2 = xavier_uniform(k2, (inner, hidden))
        b2 = (jax.random.normal(kb2, (1, hidden)) * 1e-6).astype(jnp.float32)
        gamma = jnp.ones((1, hidden), jnp.float32)
        beta = jnp.zeros((1, hidden), jnp.float32)
        return w1, b1, w2, b2, gamma, beta

    ok = True

    # ---- test 1: module-sized demo (hidden=32 -> lane-padded to 128), resident path ----
    batch, seq, hidden, inner = 2, 8, 32, 64
    kx, kp = jax.random.split(key)
    x = jax.random.normal(kx, (batch, seq, hidden), jnp.float32)
    w1, b1, w2, b2, gamma, beta = make_params(kp, hidden, inner)
    w1c, w2c = w1.astype(jnp.bfloat16), w2.astype(jnp.bfloat16)   # param-level bf16 cast

    out = feed_forward(x, w1c, b1, w2c, b2, gamma, beta, layer_norm_eps, block_rows=8)
    jax.block_until_ready(out)
    ok &= bool(jnp.allclose(out, _reference(x, w1, b1, w2, b2, gamma, beta,
                                            layer_norm_eps, cast_bf16=True),
                            atol=2e-3, rtol=2e-3))
    ok &= bool(jnp.allclose(out, _reference(x, w1, b1, w2, b2, gamma, beta,
                                            layer_norm_eps, cast_bf16=False),
                            atol=5e-2, rtol=5e-2))

    # ---- test 2: force the streamed inner-reduction path used for large inner dims -----
    hidden2, inner2 = 128, 512
    kx2, kp2 = jax.random.split(kp)
    x2 = jax.random.normal(kx2, (batch, seq, hidden2), jnp.float32)
    w1b, b1b, w2b, b2b, gammab, betab = make_params(kp2, hidden2, inner2)
    out2 = feed_forward(x2, w1b.astype(jnp.bfloat16), b1b, w2b.astype(jnp.bfloat16),
                        b2b, gammab, betab, layer_norm_eps,
                        block_rows=8, block_inner=256)
    jax.block_until_ready(out2)
    ok &= bool(jnp.allclose(out2, _reference(x2, w1b, b1b, w2b, b2b, gammab, betab,
                                             layer_norm_eps, cast_bf16=True),
                            atol=2e-3, rtol=2e-3))
    ok &= bool(jnp.allclose(out2, _reference(x2, w1b, b1b, w2b, b2b, gammab, betab,
                                             layer_norm_eps, cast_bf16=False),
                            atol=5e-2, rtol=5e-2))

    if ok:
        print("KERNEL_OK")
    else:
        raise SystemExit("kernel output mismatch")
</pallas_src>

<mosaic_0001>
module attributes {stable_mosaic.version = 11 : i64} {
  func.func @_probe_kernel(%arg0: i32, %arg1: memref<8x128xf32, #tpu.memory_space<vmem>>, %arg2: memref<8x128xf32, #tpu.memory_space<vmem>>) attributes {dimension_semantics = [#tpu.dimension_semantics<arbitrary>], iteration_bounds = array<i64: 2>, scalar_prefetch = 0 : i64, scratch_operands = 0 : i64, tpu.core_type = #tpu.core_type<tc>, window_params = [{pipeline_mode = #tpu.pipeline_mode<synchronous>, transform_indices = @transform_0, window_bounds = array<i64: 8, 128>}, {transform_indices = @transform_1, window_bounds = array<i64: 8, 128>}]} {
    %c0 = arith.constant 0 : index
    %c0_0 = arith.constant 0 : index
    %0 = vector.load %arg1[%c0, %c0_0] : memref<8x128xf32, #tpu.memory_space<vmem>>, vector<8x128xf32>
    %c0_1 = arith.constant 0 : index
    %c0_2 = arith.constant 0 : index
    %1 = vector.load %arg2[%c0_1, %c0_2] : memref<8x128xf32, #tpu.memory_space<vmem>>, vector<8x128xf32>
    tpu.vector_store %arg2[%c0_1, %c0_2], %0 {strides = array<i32>} : memref<8x128xf32, #tpu.memory_space<vmem>>, vector<8x128xf32>,
    return
  }
  func.func @transform_0(%arg0: i32) -> (i32, i32) {
    %c0_i32 = arith.constant 0 : i32
    %c0_i32_0 = arith.constant 0 : i32
    %c0_i32_1 = arith.constant 0 : i32
    return %c0_i32, %c0_i32_0 : i32, i32
  }
  func.func @transform_1(%arg0: i32) -> (i32, i32) {
    %c0_i32 = arith.constant 0 : i32
    %c0_i32_0 = arith.constant 0 : i32
    return %arg0, %c0_i32 : i32, i32
  }
}

module attributes {stable_mosaic.version = 11 : i64} {
  func.func @kernel(%arg0: i32, %arg1: memref<8x128xf32, #tpu.memory_space<vmem>>, %arg2: memref<128x64xbf16, #tpu.memory_space<vmem>>, %arg3: memref<1x64xf32, #tpu.memory_space<vmem>>, %arg4: memref<64x128xbf16, #tpu.memory_space<vmem>>, %arg5: memref<1x128xf32, #tpu.memory_space<vmem>>, %arg6: memref<1x128xf32, #tpu.memory_space<vmem>>, %arg7: memref<1x128xf32, #tpu.memory_space<vmem>>, %arg8: memref<8x128xf32, #tpu.memory_space<vmem>>) attributes {dimension_semantics = [#tpu.dimension_semantics<parallel>], iteration_bounds = array<i64: 2>, scalar_prefetch = 0 : i64, scratch_operands = 0 : i64, tpu.core_type = #tpu.core_type<tc>, window_params = [{transform_indices = @transform_0, window_bounds = array<i64: 8, 128>}, {pipeline_mode = #tpu.pipeline_mode<synchronous>, transform_indices = @transform_1, window_bounds = array<i64: 128, 64>}, {pipeline_mode = #tpu.pipeline_mode<synchronous>, transform_indices = @transform_2, window_bounds = array<i64: 1, 64>}, {pipeline_mode = #tpu.pipeline_mode<synchronous>, transform_indices = @transform_3, window_bounds = array<i64: 64, 128>}, {pipeline_mode = #tpu.pipeline_mode<synchronous>, transform_indices = @transform_4, window_bounds = array<i64: 1, 128>}, {pipeline_mode = #tpu.pipeline_mode<synchronous>, transform_indices = @transform_5, window_bounds = array<i64: 1, 128>}, {pipeline_mode = #tpu.pipeline_mode<synchronous>, transform_indices = @transform_6, window_bounds = array<i64: 1, 128>}, {transform_indices = @transform_7, window_bounds = array<i64: 8, 128>}]} {
    %c0 = arith.constant 0 : index
    %c0_0 = arith.constant 0 : index
    %0 = vector.load %arg1[%c0, %c0_0] : memref<8x128xf32, #tpu.memory_space<vmem>>, vector<8x128xf32>
    %1 = arith.truncf %0 : vector<8x128xf32> to vector<8x128xbf16>
    %c0_1 = arith.constant 0 : index
    %c0_2 = arith.constant 0 : index
    %2 = vector.load %arg2[%c0_1, %c0_2] : memref<128x64xbf16, #tpu.memory_space<vmem>>, vector<128x64xbf16>
    %cst = arith.constant dense<0.000000e+00> : vector<8x64xf32>
    %3 = tpu.matmul %1, %2, %cst {dimension_numbers = #tpu.dot_dimension_numbers<[1], [0], [0], [1], [0, 0, 1, 1], [], []>} : vector<8x128xbf16>, vector<128x64xbf16>, vector<8x64xf32> -> vector<8x64xf32>
    %c0_3 = arith.constant 0 : index
    %c0_4 = arith.constant 0 : index
    %4 = vector.load %arg3[%c0_3, %c0_4] : memref<1x64xf32, #tpu.memory_space<vmem>>, vector<1x64xf32>
    %5 = vector.broadcast %4 : vector<1x64xf32> to vector<8x64xf32>
    %6 = arith.addf %3, %5 : vector<8x64xf32>
    %cst_5 = arith.constant 5.000000e-01 : f32
    %7 = vector.broadcast %cst_5 : f32 to vector<8x64xf32>
    %8 = arith.mulf %6, %7 : vector<8x64xf32>
    %cst_6 = arith.constant 0.707106769 : f32
    %9 = vector.broadcast %cst_6 : f32 to vector<8x64xf32>
    %10 = arith.mulf %6, %9 : vector<8x64xf32>
    %11 = math.erf %10 : vector<8x64xf32>
    %cst_7 = arith.constant 1.000000e+00 : f32
    %12 = vector.broadcast %cst_7 : f32 to vector<8x64xf32>
    %13 = arith.addf %12, %11 : vector<8x64xf32>
    %14 = arith.mulf %8, %13 : vector<8x64xf32>
    %15 = arith.truncf %14 : vector<8x64xf32> to vector<8x64xbf16>
    %c0_8 = arith.constant 0 : index
    %c0_9 = arith.constant 0 : index
    %16 = vector.load %arg4[%c0_8, %c0_9] : memref<64x128xbf16, #tpu.memory_space<vmem>>, vector<64x128xbf16>
    %cst_10 = arith.constant dense<0.000000e+00> : vector<8x128xf32>
    %17 = tpu.matmul %15, %16, %cst_10 {dimension_numbers = #tpu.dot_dimension_numbers<[1], [0], [0], [1], [0, 0, 1, 1], [], []>} : vector<8x64xbf16>, vector<64x128xbf16>, vector<8x128xf32> -> vector<8x128xf32>
    %c0_11 = arith.constant 0 : index
    %c0_12 = arith.constant 0 : index
    %18 = vector.load %arg5[%c0_11, %c0_12] : memref<1x128xf32, #tpu.memory_space<vmem>>, vector<1x128xf32>
    %19 = vector.broadcast %18 : vector<1x128xf32> to vector<8x128xf32>
    %20 = arith.addf %17, %19 : vector<8x128xf32>
    %21 = arith.addf %20, %0 : vector<8x128xf32>
    %c0_13 = arith.constant 0 : index
    %c0_14 = arith.constant 0 : index
    %22 = vector.load %arg6[%c0_13, %c0_14] : memref<1x128xf32, #tpu.memory_space<vmem>>, vector<1x128xf32>
    %c0_15 = arith.constant 0 : index
    %c0_16 = arith.constant 0 : index
    %23 = vector.load %arg7[%c0_15, %c0_16] : memref<1x128xf32, #tpu.memory_space<vmem>>, vector<1x128xf32>
    %cst_17 = arith.constant dense<0.000000e+00> : vector<8xf32>
    %24 = vector.multi_reduction <add>, %21, %cst_17 [1] : vector<8x128xf32> to vector<8xf32>
    %25 = vector.shape_cast %24 : vector<8xf32> to vector<8x1xf32>
    %cst_18 = arith.constant 3.125000e-02 : f32
    %26 = vector.broadcast %cst_18 : f32 to vector<8x1xf32>
    %27 = arith.mulf %25, %26 : vector<8x1xf32>
    %28 = vector.broadcast %27 : vector<8x1xf32> to vector<8x128xf32>
    %29 = arith.subf %21, %28 : vector<8x128xf32>
    %30 = tpu.iota {dimensions = array<i32: 1>} : vector<8x128xi32>
    %c32_i32 = arith.constant 32 : i32
    %31 = vector.broadcast %c32_i32 : i32 to vector<8x128xi32>
    %32 = arith.cmpi slt, %30, %31 : vector<8x128xi32>
    %cst_19 = arith.constant 0.000000e+00 : f32
    %33 = vector.broadcast %cst_19 : f32 to vector<8x128xf32>
    %34 = arith.select %32, %29, %33 : vector<8x128xi1>, vector<8x128xf32>
    %35 = arith.mulf %34, %34 : vector<8x128xf32>
    %cst_20 = arith.constant dense<0.000000e+00> : vector<8xf32>
    %36 = vector.multi_reduction <add>, %35, %cst_20 [1] : vector<8x128xf32> to vector<8xf32>
    %37 = vector.shape_cast %36 : vector<8xf32> to vector<8x1xf32>
    %cst_21 = arith.constant 3.125000e-02 : f32
    %38 = vector.broadcast %cst_21 : f32 to vector<8x1xf32>
    %39 = arith.mulf %37, %38 : vector<8x1xf32>
    %40 = vector.broadcast %27 : vector<8x1xf32> to vector<8x128xf32>
    %41 = arith.subf %21, %40 : vector<8x128xf32>
    %cst_22 = arith.constant 9.99999996E-13 : f32
    %42 = vector.broadcast %cst_22 : f32 to vector<8x1xf32>
    %43 = arith.addf %39, %42 : vector<8x1xf32>
    %44 = math.rsqrt %43 : vector<8x1xf32>
    %45 = vector.broadcast %44 : vector<8x1xf32> to vector<8x128xf32>
    %46 = arith.mulf %41, %45 : vector<8x128xf32>
    %47 = vector.broadcast %22 : vector<1x128xf32> to vector<8x128xf32>
    %48 = arith.mulf %46, %47 : vector<8x128xf32>
    %49 = vector.broadcast %23 : vector<1x128xf32> to vector<8x128xf32>
    %50 = arith.addf %48, %49 : vector<8x128xf32>
    %c0_23 = arith.constant 0 : index
    %c0_24 = arith.constant 0 : index
    %51 = vector.load %arg8[%c0_23, %c0_24] : memref<8x128xf32, #tpu.memory_space<vmem>>, vector<8x128xf32>
    tpu.vector_store %arg8[%c0_23, %c0_24], %50 {strides = array<i32>} : memref<8x128xf32, #tpu.memory_space<vmem>>, vector<8x128xf32>,
    return
  }
  func.func @transform_0(%arg0: i32) -> (i32, i32) {
    %c0_i32 = arith.constant 0 : i32
    %c0_i32_0 = arith.constant 0 : i32
    return %arg0, %c0_i32 : i32, i32
  }
  func.func @transform_1(%arg0: i32) -> (i32, i32) {
    %c0_i32 = arith.constant 0 : i32
    %c0_i32_0 = arith.constant 0 : i32
    %c0_i32_1 = arith.constant 0 : i32
    return %c0_i32, %c0_i32_0 : i32, i32
  }
  func.func @transform_2(%arg0: i32) -> (i32, i32) {
    %c0_i32 = arith.constant 0 : i32
    %c0_i32_0 = arith.constant 0 : i32
    %c0_i32_1 = arith.constant 0 : i32
    return %c0_i32, %c0_i32_0 : i32, i32
  }
  func.func @transform_3(%arg0: i32) -> (i32, i32) {
    %c0_i32 = arith.constant 0 : i32
    %c0_i32_0 = arith.constant 0 : i32
    %c0_i32_1 = arith.constant 0 : i32
    return %c0_i32, %c0_i32_0 : i32, i32
  }
  func.func @transform_4(%arg0: i32) -> (i32, i32) {
    %c0_i32 = arith.constant 0 : i32
    %c0_i32_0 = arith.constant 0 : i32
    %c0_i32_1 = arith.constant 0 : i32
    return %c0_i32, %c0_i32_0 : i32, i32
  }
  func.func @transform_5(%arg0: i32) -> (i32, i32) {
    %c0_i32 = arith.constant 0 : i32
    %c0_i32_0 = arith.constant 0 : i32
    %c0_i32_1 = arith.constant 0 : i32
    return %c0_i32, %c0_i32_0 : i32, i32
  }
  func.func @transform_6(%arg0: i32) -> (i32, i32) {
    %c0_i32 = arith.constant 0 : i32
    %c0_i32_0 = arith.constant 0 : i32
    %c0_i32_1 = arith.constant 0 : i32
    return %c0_i32, %c0_i32_0 : i32, i32
  }
  func.func @transform_7(%arg0: i32) -> (i32, i32) {
    %c0_i32 = arith.constant 0 : i32
    %c0_i32_0 = arith.constant 0 : i32
    return %arg0, %c0_i32 : i32, i32
  }
}

</mosaic_0001>

<bundles_post_ra>
// kernel: tpu_custom_call.1
= control target key start
LH: loop header
LB: loop body
LE: loop exit
PB: predicated region body
PF: predicated region fallthrough
CT: control target
= control target key end

     0   :  { %6 = vsyncpa [#allocation3], 0  ;;  %s481_s0 = inlined_call_operand.hbm [shape: f32[8,128], index: 0, kind: input, shape index: {}]   ;;  %s482_s1 = inlined_call_operand.hbm [shape: f32[16,128], index: 1, kind: output, shape index: {}]  }
   0x1   :  { %7 = vsyncpa [#allocation4], 0 }
   0x2   :  { %9 = vsyncpa [#allocation4 + $0x1], 0  ;;  %s351_s6 = smov 0   ;;  %s353_s7 = smov 0  }
   0x3   :  { %s355_s8 = smov 0   ;;  %s357_s9 = smov 0  }
   0x4 LB: > { %s372_s10 = sadd.s32 4294967295, %s337_s9   ;;  %s183_s11 = sadd.s32 4294967294, %s337_s9   ;;  %s337_s9 = sphi %s357_s9, %s498_s9   ;;  %s333_s8 = sphi %s355_s8, %s497_s8   ;;  %s329_s7 = sphi %s353_s7, %s496_s7   ;;  %s325_s6 = sphi %s351_s6, %s495_s6  }
   0x5   : > { %s376_s12 = sadd.s32 1, %s337_s9   ;;  %s43_s13 = sadd.s32 1, %s333_s8 }
   0x6   : > { %s40_s14 = ssub.s32 %s337_s9, %s376_s12  ;;  %p53_p0 = scmp.ne.s32.totalorder %s333_s8, %s329_s7 }
   0x7   : > { %p41_p1 = scmp.eq.s32.totalorder %s40_s14, 0  ;;  %p54_p2 = scmp.eq.s32.totalorder %s372_s10, 1 }
   0x8   : > { %p59_p3 = scmp.ne.s32.totalorder %s329_s7, %s325_s6  ;;  %p60_p4 = scmp.eq.s32.totalorder %s183_s11, 1 }
   0x9   : > { %s387_s15 = scalar_select %p41_p1, %s333_s8, %s43_s13  }
   0xa   : > { %p389_p5 = por %p54_p2, %p53_p0  ;;  %p393_p6 = por %p60_p4, %p59_p3 }
   0xb   : > { %p184_p7 = scmp.ge.s32.totalorder %s337_s9, 1  ;;  %p67_p8 = scmp.lt.s32.totalorder %s337_s9, 3 }
   0xc   : > { %s486_s16 = scalar_select %p389_p5, 1, 0 }
   0xd   : > { %s487_s17 = scalar_select %p393_p6, 1, 0 }
   0xe   : > { %p483_p9 = scmp.eq.s32.totalorder %s372_s10, 0  ;;  %p400_p10 = pnand %p184_p7, %p67_p8 }
   0xf   : > { %s339_s19 = smov [#allocation2]   ;;  %s243_s24 = scalar_lea.hbm %s481_s0, 128 }
  0x10   : > { %s488_s18 = scalar_select %p400_p10, 1, 0 }
  0x11   : > { %s80_s20 = sshll.u32 %s339_s19, 4  ;;  %p199_p11 = pneg %p400_p10  ;;  %s81_s20 = int_to_ptr.vmem [resolvable:$true] %s80_s20 }
  0x12   : > { %p244_p13 = scmp.ne.s32.totalorder %s481_s0, %s243_s24  ;;  %p250_p3 = scmp.lt.u32.totalorder %s243_s24, %s481_s0 }
  0x13   : > { %p408_p12 = pnand %p483_p9, %p199_p11 }
  0x15   : > { %p245_p0 = pneg %p408_p12 }
  0x17   : > { %p246_p1 = pnand %p245_p0, %p244_p13 }
  0x19   : > { %p247_p2 = pneg %p246_p1 }
  0x1b   : > { %p252_p4 = pnand %p250_p3, %p247_p2 }
  0x1d   : > { %255 = shalt.err (!%p252_p4)
}
  0x1e   : > { %s256_s29 = scalar_lea.vmem %s81_s20, 128  ;;  %p264_p9 = scmp.lt.s32.totalorder %s81_s20, %s81_s20 }
  0x1f   : > { %p257_p7 = scmp.ne.s32.totalorder %s81_s20, %s256_s29  ;;  %p265_p6 = scmp.lt.s32.totalorder %s256_s29, %s256_s29 }
  0x21   : > { %p259_p8 = pnand %p257_p7, %p245_p0  ;;  %p266_p5 = por %p265_p6, %p264_p9 }
  0x23   : > { %p260_p11 = pneg %p259_p8 }
  0x25   : > { %p267_p10 = pnand %p266_p5, %p260_p11 }
  0x27   : > { %270 = shalt.err (!%p267_p10)
}
  0x28   : > { %202 = dma.hbm_to_vmem [thread:$0]  (!%p408_p12), %s481_s0, 128, %s81_s20, [#allocation3]  }
  0x29   : > { %p490_p13 = scmp.ne.s32.totalorder %s488_s18, 0 }
  0x2a   : > { %p491_p1 = scmp.eq.s32.totalorder (!%p490_p13), %s372_s10, 0 }
  0x2b   : > { %93 = sbr.rel (%p490_p13) target bundleno = 77 (0x4d), region = 24 }
  0x32   : > { %316 = dma.done.wait (%p491_p1), [#allocation3], 128   ;;  %p492_p0 = pmov %p491_p1 }
  0x33   : > { %s105_s3 = sand.u32 1, %s329_s7   ;;  %s190_s13 = sshll.u32 %s372_s10, 7  ;;  %v108_v0 = vld [vmem:[#allocation2] sm:$0xff] }
  0x34   : > { %318 = vsyncadd (%p492_p0), [#allocation3], 4294967168  ;;  %s188_s4 = sshll.u32 %s105_s3, 3  ;;  %s441_s18 = scalar_lea.hbm %s482_s1, %s190_s13 }
  0x35   : > { %s107_s5 = scalar_lea.vmem [#allocation5], %s188_s4  ;;  %s111_s20 = scalar_lea.sflag [#allocation4], %s105_s3 }
  0x36   : > { %s124_s11 = sshll.u32 %s107_s5, 4  ;;  %109 = vst [vmem:[%s107_s5] sm:$0xff] %v108_v0  ;;  %p493_p6 = scmp.ne.s32.totalorder %s486_s16, 0  ;;  %s436_s11 = int_to_ptr.vmem [resolvable:$true] %s124_s11 }
  0x37   : > { %s271_s21 = scalar_lea.vmem %s436_s11, 128  ;;  %s340_s22 = smov [#allocation5]  }
  0x38   : > { %p272_p5 = scmp.ne.s32.totalorder %s436_s11, %s271_s21  ;;  %s275_s10 = sshll.u32 %s340_s22, 4  ;;  %s276_s10 = int_to_ptr.vmem [resolvable:$false] %s275_s10 }
  0x39   : > { %s277_s23 = scalar_lea.vmem %s276_s10, 256  ;;  %p278_p12 = scmp.lt.s32.totalorder %s436_s11, %s276_s10 }
  0x3a   : > { %p273_p9 = pnand %p272_p5, %p493_p6  ;;  %p279_p2 = scmp.lt.s32.totalorder %s277_s23, %s271_s21 }
  0x3c   : > { %p274_p10 = pneg %p273_p9  ;;  %p280_p3 = por %p279_p2, %p278_p12 }
  0x3e   : > { %p281_p4 = pnand %p280_p3, %p274_p10 }
  0x40   : > { %284 = shalt.err (!%p281_p4)
}
  0x41   : > { %s285_s24 = scalar_lea.hbm %s441_s18, 128  ;;  %s289_s27 = scalar_lea.hbm %s482_s1, 256 }
  0x42   : > { %p286_p7 = scmp.ne.s32.totalorder %s441_s18, %s285_s24  ;;  %p290_p13 = scmp.lt.u32.totalorder %s441_s18, %s482_s1 }
  0x43   : > { %p291_p1 = scmp.lt.u32.totalorder %s289_s27, %s285_s24  ;;  %p293_p5 = scmp.lt.u32.totalorder %s285_s24, %s441_s18 }
  0x44   : > { %p287_p8 = pnand %p286_p7, %p493_p6 }
  0x45   : > { %p292_p0 = por %p291_p1, %p290_p13 }
  0x46   : > { %p288_p11 = pneg %p287_p8 }
  0x47   : > { %p294_p9 = por %p293_p5, %p292_p0 }
  0x49   : > { %p295_p10 = pnand %p294_p9, %p288_p11 }
  0x4b   : > { %298 = shalt.err (!%p295_p10)
}
  0x4c   : > { %197 = dma.vmem_to_hbm [thread:$0]  (%p493_p6), %s436_s11, 128, %s441_s18, %s111_s20  }
  0x4d PF: > { %p209_p12 = scmp.ge.s32.totalorder %s337_s9, 2  ;;  %s136_s30 = sand.u32 1, %s325_s6  }
  0x4e   : > { %p494_p2 = scmp.ne.s32.totalorder %s487_s17, 0  ;;  %s137_s2 = scalar_lea.sflag [#allocation4], %s136_s30 }
  0x50   : > { %p204_p3 = pnand %p209_p12, %p494_p2 }
  0x52   : > { %320 = dma.done.wait (!%p204_p3), %s137_s2, 128  }
  0x53   : > { %322 = vsyncadd (!%p204_p3), %s137_s2, 4294967168  ;;  %p12_p4 = scmp.ge.s32.totalorder %s376_s12, 4   ;;  %s495_s6 = smov %s329_s7 }
  0x54   : > { %s496_s7 = smov %s333_s8  ;;  %s497_s8 = smov %s387_s15 }
  0x55   : > { %s498_s9 = smov %s376_s12  ;;  %14 = sbr.rel (!%p12_p4) target bundleno = 4 (0x4), region = 61 }
  0x5c   :  { %142 = vsyncpa [#allocation3], 1 }
  0x5d   :  { %144 = vsyncpa [#allocation3 + $0x1], 1 }
  0x5e   :  { %145 = vsyncpa [#allocation4], 1 }
  0x5f   :  { %147 = vsyncpa [#allocation4 + $0x1], 1 }

// kernel: tpu_custom_call.1
= control target key start
LH: loop header
LB: loop body
LE: loop exit
PB: predicated region body
PF: predicated region fallthrough
CT: control target
= control target key end

     0   :  { %12 = vsyncpa [#allocation3], 0  ;;  %s968_s0 = inlined_call_operand.vmem [shape: f32[16,128], index: 0, kind: input, shape index: {}]   ;;  %s969_s1 = inlined_call_operand.vmem [shape: bf16[128,64], index: 1, kind: input, shape index: {}]   ;;  %s970_s2 = inlined_call_operand.vmem [shape: f32[1,64], index: 2, kind: input, shape index: {}]   ;;  %s971_s3 = inlined_call_operand.vmem [shape: bf16[64,128], index: 3, kind: input, shape index: {}]   ;;  %s972_s4 = inlined_call_operand.vmem [shape: f32[1,128], index: 4, kind: input, shape index: {}]   ;;  %s973_s5 = inlined_call_operand.vmem [shape: f32[1,128], index: 5, kind: input, shape index: {}]   ;;  %s974_s6 = inlined_call_operand.vmem [shape: f32[1,128], index: 6, kind: input, shape index: {}]   ;;  %s975_s7 = inlined_call_operand.hbm [shape: f32[16,128], index: 7, kind: output, shape index: {}]  }
   0x1   :  { %14 = vsyncpa [#allocation3 + $0x1], 0  ;;  %s820_s24 = smov 0   ;;  %s822_s25 = smov 0  }
   0x2   :  { %s824_s26 = smov 0   ;;  %s826_s27 = smov 0  }
   0x3 LB: > { %s841_s28 = sadd.s32 4294967295, %s775_s27   ;;  %s583_s29 = sadd.s32 4294967294, %s775_s27   ;;  %s775_s27 = sphi %s826_s27, %s981_s27   ;;  %s771_s26 = sphi %s824_s26, %s980_s26   ;;  %s767_s25 = sphi %s822_s25, %s979_s25   ;;  %s763_s24 = sphi %s820_s24, %s978_s24  }
   0x4   : > { %s845_s30 = sadd.s32 1, %s775_s27   ;;  %s179_s8 = sadd.s32 1, %s771_s26 }
   0x5   : > { %s176_s9 = ssub.s32 %s775_s27, %s845_s30  ;;  %p189_p0 = scmp.ne.s32.totalorder %s771_s26, %s767_s25 }
   0x6   : > { %p177_p1 = scmp.eq.s32.totalorder %s176_s9, 0  ;;  %p190_p2 = scmp.eq.s32.totalorder %s841_s28, 1 }
   0x7   : > { %p195_p3 = scmp.ne.s32.totalorder %s767_s25, %s763_s24  ;;  %p196_p4 = scmp.eq.s32.totalorder %s583_s29, 1 }
   0x8   : > { %s856_s10 = scalar_select %p177_p1, %s771_s26, %s179_s8  }
   0x9   : > { %p858_p5 = por %p190_p2, %p189_p0  ;;  %p862_p6 = por %p196_p4, %p195_p3 }
   0xa   : > { %p586_p7 = scmp.ge.s32.totalorder %s775_s27, 1  ;;  %p239_p8 = scmp.lt.s32.totalorder %s775_s27, 3 }
   0xc   : > { %p240_p9 = pnand %p586_p7, %p239_p8 }
   0xd   : > { %v697_v0 = vld [vmem:[%s969_s1] sm:$0xff] (!%p240_p9)   ;;  %v777_v1 = vmov (!%p240_p9), 0.0   ;;  %v698_v2 = vld [vmem:[%s969_s1 + $0x8] sm:$0xff] (!%p240_p9)   ;;  %vm778_vm0 = vmmov (!%p240_p9), 0   ;;  %v699_v3 = vld [vmem:[%s969_s1 + $0x10] sm:$0xff] (!%p240_p9)   ;;  %p270_p10 = scmp.lt.s32.totalorder (!%p240_p9), %s841_s28, 1  ;;  %v484_v34 = vlaneseq (!%p240_p9) }
   0xe   : > { %243 = sbr.rel (%p240_p9) target bundleno = 821 (0x335), region = 48  ;;  %624 = vmatprep.subr.bf16.mxu0 (!%p240_p9), %v777_v1  ;;  %644 = vmatprep.subr.bf16.mxu1 (!%p240_p9), %v777_v1  ;;  %v700_v4 = vld [vmem:[%s969_s1 + $0x18] sm:$0xff] (!%p240_p9)   ;;  %v701_v5 = vld [vmem:[%s969_s1 + $0x20] sm:$0xff] (!%p240_p9)   ;;  %v702_v6 = vld [vmem:[%s969_s1 + $0x28] sm:$0xff] (!%p240_p9)   ;;  %vm433_vm1 = vcmask (!%p240_p9), 523264   ;;  %s267_s18 = sand.u32 (!%p240_p9), 1, %s767_s25  }
   0xf   : > { %625 = vmatpush3.bf16.msra.mxu0 (!%p240_p9), %v697_v0  ;;  %640 = vmatprep.mubr.msk.bf16.mxu0 (!%p240_p9), %vm778_vm0, %v777_v1  ;;  %v703_v7 = vld [vmem:[%s969_s1 + $0x30] sm:$0xff] (!%p240_p9)   ;;  %v704_v8 = vld [vmem:[%s969_s1 + $0x38] sm:$0xff] (!%p240_p9)   ;;  %v705_v11 = vld [vmem:[%s971_s3] sm:$0xff] (!%p240_p9)   ;;  %v485_v35 = vand.u32 (!%p240_p9), 127, %v484_v34  ;;  %s587_s19 = sshll.u32 (!%p240_p9), %s267_s18, 3  ;;  %s607_s29 = sshll.u32 (!%p240_p9), %s841_s28, 7 }
  0x10   : > { %626 = vmatprep.subr.bf16.mxu0 (!%p240_p9), %v777_v1  ;;  %652 = vmatprep.mubr.msk.bf16.mxu1 (!%p240_p9), %vm778_vm0, %v777_v1  ;;  %v706_v12 = vld [vmem:[%s971_s3 + $0x8] sm:$0xff] (!%p240_p9)   ;;  %v707_v13 = vld [vmem:[%s971_s3 + $0x10] sm:$0xff] (!%p240_p9)   ;;  %v708_v14 = vld [vmem:[%s971_s3 + $0x18] sm:$0xff] (!%p240_p9)   ;;  %s269_s8 = scalar_lea.vmem (!%p240_p9), [#allocation2], %s587_s19  ;;  %s926_s15 = scalar_lea.hbm (!%p240_p9), %s975_s7, %s607_s29 }
  0x11   : > { %645 = vmatpush3.bf16.msra.mxu1 (!%p240_p9), %v705_v11  ;;  %v589_v15 = vld [vmem:[%s970_s2] ss:$0 sm:$0xff] (!%p240_p9)  ;;  %vm486_vm2 = vcmp.lt.s32.totalorder (!%p240_p9), %v485_v35, 32  ;;  %s511_s16 = scalar_lea.sflag (!%p240_p9), [#allocation3], %s267_s18 }
  0x12   : > { %646 = vmatprep.subr.bf16.mxu1 (!%p240_p9), %v777_v1  ;;  %v598_v27 = vld [vmem:[%s972_s4] ss:$0 sm:$0xff] (!%p240_p9) }
  0x13   : > { %627 = vmatpush3.bf16.msra.mxu0 (!%p240_p9), %v698_v2  ;;  %v604_v45 = vld [vmem:[%s973_s5] ss:$0 sm:$0xff] (!%p240_p9) }
  0x14   : > { %628 = vmatprep.subr.bf16.mxu0 (!%p240_p9), %v777_v1  ;;  %v605_v47 = vld [vmem:[%s974_s6] ss:$0 sm:$0xff] (!%p240_p9) }
  0x15   : > { %s271_s23 = scalar_select %p270_p10, %s841_s28, 1  ;;  %647 = vmatpush3.bf16.msra.mxu1 %v706_v12 }
  0x16   : > { %648 = vmatprep.subr.bf16.mxu1 %v777_v1  ;;  %s779_s28 = smov [#allocation2]  }
  0x17   : > { %629 = vmatpush3.bf16.msra.mxu0 %v699_v3  ;;  %s588_s9 = sshll.u32 %s271_s23, 3  ;;  %s717_s19 = sshll.u32 %s779_s28, 4  ;;  %s718_s19 = int_to_ptr.vmem [resolvable:$false] %s717_s19 }
  0x18   : > { %630 = vmatprep.subr.bf16.mxu0 %v777_v1  ;;  %s273_s17 = scalar_lea.vmem %s968_s0, %s588_s9  ;;  %s524_s9 = sshll.u32 %s269_s8, 4  ;;  %s928_s9 = int_to_ptr.vmem [resolvable:$true] %s524_s9 }
  0x19   : > { %v275_v9 = vld [vmem:[%s273_s17] sm:$0xff]  ;;  %649 = vmatpush3.bf16.msra.mxu1 %v707_v13  ;;  %s713_s17 = scalar_lea.vmem %s928_s9, 128  ;;  %s719_s20 = scalar_lea.vmem %s718_s19, 256 }
  0x1a   : > { %v276_v10 = vpack.c.bf16 %v275_v9, %v275_v9  ;;  %650 = vmatprep.subr.bf16.mxu1 %v777_v1  ;;  %p714_p11 = scmp.ne.s32.totalorder %s928_s9, %s713_s17  ;;  %p720_p0 = scmp.lt.s32.totalorder %s928_s9, %s718_s19 }
  0x1b   : > { %631 = vmatpush3.bf16.msra.mxu0 %v700_v4  ;;  %p721_p1 = scmp.lt.s32.totalorder %s719_s20, %s713_s17 }
  0x1c   : > { %632 = vmatprep.subr.bf16.mxu0 %v777_v1  ;;  %p715_p12 = pnand %p714_p11, %p858_p5 }
  0x1d   : > { %651 = vmatpush3.bf16.msra.mxu1 %v708_v14  ;;  %p722_p2 = por %p721_p1, %p720_p0 }
  0x1e   : > { %p716_p13 = pneg %p715_p12 }
  0x1f   : > { %633 = vmatpush3.bf16.msra.mxu0 %v701_v5 }
  0x20   : > { %634 = vmatprep.subr.bf16.mxu0 %v777_v1  ;;  %p723_p3 = pnand %p722_p2, %p716_p13 }
  0x23   : > { %635 = vmatpush3.bf16.msra.mxu0 %v702_v6 }
  0x24   : > { %636 = vmatprep.subr.bf16.mxu0 %v777_v1 }
  0x27   : > { %637 = vmatpush3.bf16.msra.mxu0 %v703_v7 }
  0x28   : > { %638 = vmatprep.subr.bf16.mxu0 %v777_v1 }
  0x2b   : > { %639 = vmatpush3.bf16.msra.mxu0 %v704_v8 }
  0x2e   : > { %641 = vmatmul.mubr.bf16.vlgmr.msra.gmra.mrb[0].mxu0 %v276_v10 }
 0x101   : > { %v382_v16 = vpop.f32.mrb[0].mxu0 }
 0x102   : > { %v383_v17 = vadd.f32 %v589_v15, %v382_v16  ;;  %v642_v18 = vpop.f32.mrb[1].mxu0 }
 0x103   : > { %v385_v19 = vpop.f32.mrb[2].mxu0 }
 0x104   : > { %v389_v20 = vmul.f32 0.70710677, %v383_v17  ;;  %v643_v21 = vpop.f32.mrb[3].mxu0  ;;  %v388_v23 = vmul.f32 0.5, %v383_v17 }
 0x106   : > { %709 = verf.f32 %v389_v20 }
 0x110   : > { %v710_v22 = vpop.eup %709 }
 0x111   : > { %v391_v24 = vadd.f32 1.0, %v710_v22 }
 0x113   : > { %v392_v25 = vmul.f32 %v391_v24, %v388_v23 }
 0x115   : > { %v393_v26 = vpack.c.bf16 %v392_v25, %v392_v25 }
 0x117   : > { %653 = vmatmul.mubr.msk.bf16.vlgmr.msra.gmra.mrb[0].mxu1 %vm433_vm1, %v393_v26 }
 0x1ea   : > { %v471_v28 = vpop.f32.mrb[0].mxu1 }
 0x1eb   : > { %v472_v29 = vadd.f32 %v598_v27, %v471_v28  ;;  %v654_v30 = vpop.f32.mrb[1].mxu1 }
 0x1ec   : > { %v474_v31 = vpop.f32.mrb[2].mxu1 }
 0x1ed   : > { %v655_v32 = vpop.f32.mrb[3].mxu1  ;;  %v477_v33 = vadd.f32 %v472_v29, %v275_v9 }
 0x1ef   : > { %480 = vadd.xlane.f32.xlu0 %v477_v33 }
 0x27c   : > { %v481_v36 = vpop.xlane.xlu0 %480 }
 0x27d   : > { %v482_v37 = vmul.f32 0.03125, %v481_v36 }
 0x27f   : > { %v483_v38 = vsub.f32 %v477_v33, %v482_v37 }
 0x281   : > { %v487_v39 = vsel %vm486_vm2, %v483_v38, 0.0 }
 0x282   : > { %v488_v40 = vmul.f32 %v487_v39, %v487_v39 }
 0x284   : > { %489 = vadd.xlane.f32.xlu0 %v488_v40 }
 0x311   : > { %v490_v41 = vpop.xlane.xlu0 %489 }
 0x312   : > { %v491_v42 = vmul.f32 0.03125, %v490_v41 }
 0x314   : > { %v492_v43 = vadd.f32 1e-12, %v491_v42 }
 0x316   : > { %711 = vrsqrt.f32 %v492_v43 }
 0x320   : > { %v712_v44 = vpop.eup %711 }
 0x321   : > { %v494_v46 = vmul.f32 %v712_v44, %v483_v38 }
 0x323   : > { %v501_v48 = vmul.f32 %v604_v45, %v494_v46 }
 0x325   : > { %v508_v49 = vadd.f32 %v605_v47, %v501_v48 }
 0x327   : > { %509 = vst [vmem:[%s269_s8] sm:$0xff] %v508_v49 }
 0x328   : > { %726 = shalt.err (!%p723_p3)
}
 0x329   : > { %s727_s18 = scalar_lea.hbm %s926_s15, 128  ;;  %s731_s23 = scalar_lea.hbm %s975_s7, 256 }
 0x32a   : > { %p728_p4 = scmp.ne.s32.totalorder %s926_s15, %s727_s18  ;;  %p732_p9 = scmp.lt.u32.totalorder %s926_s15, %s975_s7 }
 0x32b   : > { %p733_p10 = scmp.lt.u32.totalorder %s731_s23, %s727_s18  ;;  %p735_p12 = scmp.lt.u32.totalorder %s727_s18, %s926_s15 }
 0x32c   : > { %p729_p7 = pnand %p728_p4, %p858_p5 }
 0x32d   : > { %p734_p11 = por %p733_p10, %p732_p9 }
 0x32e   : > { %p730_p8 = pneg %p729_p7 }
 0x32f   : > { %p736_p13 = por %p735_p12, %p734_p11 }
 0x331   : > { %p737_p0 = pnand %p736_p13, %p730_p8 }
 0x333   : > { %740 = shalt.err (!%p737_p0)
}
 0x334   : > { %656 = dma.vmem_to_hbm [thread:$0]  (%p858_p5), %s928_s9, 128, %s926_s15, %s511_s16  }
 0x335 PF: > { %p662_p1 = scmp.ge.s32.totalorder %s775_s27, 2  ;;  %s536_s13 = sand.u32 1, %s763_s24  }
 0x336   : > { %s537_s14 = scalar_lea.sflag [#allocation3], %s536_s13 }
 0x337   : > { %p659_p2 = pnand %p662_p1, %p862_p6 }
 0x339   : > { %758 = dma.done.wait (!%p659_p2), %s537_s14, 128  }
 0x33a   : > { %760 = vsyncadd (!%p659_p2), %s537_s14, 4294967168  ;;  %p17_p3 = scmp.ge.s32.totalorder %s845_s30, 4   ;;  %s978_s24 = smov %s767_s25 }
 0x33b   : > { %s979_s25 = smov %s771_s26  ;;  %s980_s26 = smov %s856_s10 }
 0x33c   : > { %s981_s27 = smov %s845_s30  ;;  %19 = sbr.rel (!%p17_p3) target bundleno = 3 (0x3), region = 83 }
 0x343   :  { %542 = vsyncpa [#allocation3], 1 }
 0x344   :  { %544 = vsyncpa [#allocation3 + $0x1], 1 }

</bundles_post_ra>
